<compile_context>
chip_gen: v5e
topology: v5e:2x2
jax: 0.10.0
libtpu: 0.0.40
codegen_flags: <defaults>
</compile_context>

<pallas_src>
import functools

import jax
import jax.numpy as jnp
from jax.experimental import pallas as pl
from jax.experimental.pallas import tpu as pltpu


OUT_SIZE = 10
IMG_H = 28
IMG_W = 28
CROP = 5
IN_FEATS_CROP = 18 * 18              # 324 (original Linear fan-in)
IN_FEATS_FULL = IMG_H * IMG_W        # 784 (after folding the crop into w1)
HID = 10
HID_PAD = 128                        # zero-padded hidden width (full lane vreg)
OUT_FEATS = 4 * 4 * OUT_SIZE         # 160


def _round_up(n, m):
    return ((n + m - 1) // m) * m


# --------------------------------------------------------------------------
# Kernel
# --------------------------------------------------------------------------
def _mlp_kernel(x_ref, w1_ref, b1_ref, w2_ref, b2_ref, w3_ref, b3_ref, o_ref):
    # x_ref : (TB, 784)            f32
    # w1    : (784, 128)           f32 or bf16     b1: (1, 128) f32
    # w2    : (128, 128)           f32 or bf16     b2: (1, 128) f32
    # w3    : (128, 160)           f32 or bf16     b3: (1, 160) f32
    # o_ref : (TB, 160)            f32
    x = x_ref[...].astype(w1_ref.dtype)
    h1 = jnp.dot(x, w1_ref[...], preferred_element_type=jnp.float32) + b1_ref[...]
    h1 = jnp.maximum(h1, 0.0)
    h2 = jnp.dot(h1.astype(w2_ref.dtype), w2_ref[...],
                 preferred_element_type=jnp.float32) + b2_ref[...]
    h2 = jnp.maximum(h2, 0.0)
    out = jnp.dot(h2.astype(w3_ref.dtype), w3_ref[...],
                  preferred_element_type=jnp.float32) + b3_ref[...]
    o_ref[...] = out.astype(o_ref.dtype)


# --------------------------------------------------------------------------
# Parameter preparation (hoisted out of the hot forward path)
# --------------------------------------------------------------------------
def _expand_crop_into_w1(w1, H=IMG_H, W=IMG_W, crop=CROP):
    """Scatter w1 (324, HID) into (H*W, HID); cropped-border rows are zero."""
    hk = H - 2 * crop
    wk = W - 2 * crop
    assert w1.shape[0] == hk * wk
    rows = ((jnp.arange(hk)[:, None] + crop) * W
            + (jnp.arange(wk)[None, :] + crop)).reshape(-1)           # (324,)
    w_full = jnp.zeros((H * W, w1.shape[1]), w1.dtype)
    return w_full.at[rows].set(w1)


def prepare_params(params, *, use_bf16=False):
    """Fold crop into w1, zero-pad hidden width to HID_PAD, optional bf16."""
    w1, b1, w2, b2, w3, b3 = params
    wdt = jnp.bfloat16 if use_bf16 else jnp.float32
    w1x = _expand_crop_into_w1(w1)                                     # (784, 10)
    w1p = jnp.zeros((IN_FEATS_FULL, HID_PAD), jnp.float32).at[:, :HID].set(w1x)
    b1p = jnp.zeros((1, HID_PAD), jnp.float32).at[:, :HID].set(b1)
    w2p = jnp.zeros((HID_PAD, HID_PAD), jnp.float32).at[:HID, :HID].set(w2)
    b2p = jnp.zeros((1, HID_PAD), jnp.float32).at[:, :HID].set(b2)
    w3p = jnp.zeros((HID_PAD, OUT_FEATS), jnp.float32).at[:HID, :].set(w3)
    b3p = jnp.asarray(b3, jnp.float32).reshape(1, OUT_FEATS)
    return (w1p.astype(wdt), b1p, w2p.astype(wdt), b2p, w3p.astype(wdt), b3p)


def _default_use_bf16():
    """bf16 weights only pay off on v5e (f32 MXU emulation cost); see review."""
    try:
        kind = jax.devices()[0].device_kind.lower()
    except Exception:
        return False
    return ("v5e" in kind) or ("v5 lite" in kind) or ("v5lite" in kind)


# --------------------------------------------------------------------------
# Forward
# --------------------------------------------------------------------------
def fcnet_segmentation(x, prepared_params, *, out_size=OUT_SIZE, tb=2048):
    """x: (B, 1, 28, 28) float32 NCHW. Returns (B, out_size, 4, 4)."""
    B = x.shape[0]
    assert x.shape[1:] == (1, IMG_H, IMG_W), x.shape
    w1p, b1p, w2p, b2p, w3p, b3p = prepared_params

    # Free, contiguous flatten of the whole image (crop lives inside w1p).
    x_flat = x.reshape(B, IN_FEATS_FULL)                               # (B, 784)

    # Batch tile: >= 2 grid steps when B allows (v7x megacore), rows % 8 == 0.
    tb_eff = int(min(tb, max(8, _round_up(pl.cdiv(B, 2), 8))))
    if B < tb_eff:                      # tiny batch only (< one minimum tile)
        x_flat = jnp.pad(x_flat, ((0, tb_eff - B), (0, 0)))
    b_rows = max(B, tb_eff)             # rows presented to the kernel
    nb = pl.cdiv(b_rows, tb_eff)        # ragged last block handled by Pallas

    const = lambda shape: pl.BlockSpec(shape, lambda i, _s=len(shape): (0,) * _s)

    # Explicit VMEM budget: double-buffered x/out streams + resident weights
    # + f32 intermediates, with margin; capped under v7x's 64 MiB/TC.
    weight_bytes = sum(int(p.size) * p.dtype.itemsize
                       for p in (w1p, b1p, w2p, b2p, w3p, b3p))
    step_bytes = tb_eff * (2 * IN_FEATS_FULL * x_flat.dtype.itemsize
                           + 2 * OUT_FEATS * 4
                           + (2 * HID_PAD + OUT_FEATS) * 4)
    vmem_limit = int(min(max(32 << 20, int(1.3 * (step_bytes + 2 * weight_bytes))),
                         48 << 20))

    flops = 2 * b_rows * (IN_FEATS_FULL * HID_PAD
                          + HID_PAD * HID_PAD
                          + HID_PAD * OUT_FEATS)
    bytes_accessed = (b_rows * IN_FEATS_FULL * x_flat.dtype.itemsize
                      + weight_bytes
                      + b_rows * OUT_FEATS * 4)

    out_flat = pl.pallas_call(
        _mlp_kernel,
        out_shape=jax.ShapeDtypeStruct((b_rows, OUT_FEATS), jnp.float32),
        grid=(nb,),
        in_specs=[
            pl.BlockSpec((tb_eff, IN_FEATS_FULL), lambda i: (i, 0)),   # x tile
            const((IN_FEATS_FULL, HID_PAD)),                           # w1
            const((1, HID_PAD)),                                       # b1
            const((HID_PAD, HID_PAD)),                                 # w2
            const((1, HID_PAD)),                                       # b2
            const((HID_PAD, OUT_FEATS)),                               # w3
            const((1, OUT_FEATS)),                                     # b3
        ],
        out_specs=pl.BlockSpec((tb_eff, OUT_FEATS), lambda i: (i, 0)),
        compiler_params=pltpu.CompilerParams(
            dimension_semantics=("parallel",),
            vmem_limit_bytes=vmem_limit),
        cost_estimate=pl.CostEstimate(
            flops=flops, transcendentals=0, bytes_accessed=bytes_accessed),
    )(x_flat, w1p, b1p, w2p, b2p, w3p, b3p)

    return out_flat[:B].reshape(-1, out_size, 4, 4)


# --------------------------------------------------------------------------
# Init & reference
# --------------------------------------------------------------------------
def init_params(key):
    """Deterministic parameter init (shapes match the nn.Linear layers)."""
    ks = jax.random.split(key, 6)

    def lin(kw, kb, fan_in, fan_out):
        bound = 1.0 / jnp.sqrt(fan_in)
        w = jax.random.uniform(kw, (fan_in, fan_out), jnp.float32, -bound, bound)
        b = jax.random.uniform(kb, (1, fan_out), jnp.float32, -bound, bound)
        return w, b

    w1, b1 = lin(ks[0], ks[1], IN_FEATS_CROP, HID)
    w2, b2 = lin(ks[2], ks[3], HID, HID)
    w3, b3 = lin(ks[4], ks[5], HID, OUT_FEATS)
    return (w1, b1, w2, b2, w3, b3)


def _reference(x, params):
    """Pure-JAX reference mirroring the PyTorch forward."""
    w1, b1, w2, b2, w3, b3 = params
    B = x.shape[0]
    h = x[:, :, CROP:-CROP, CROP:-CROP].reshape(B, -1)
    h = jnp.maximum(h @ w1 + b1, 0.0)
    h = jnp.maximum(h @ w2 + b2, 0.0)
    h = h @ w3 + b3
    return h.reshape(-1, OUT_SIZE, 4, 4)


if __name__ == "__main__":
    key = jax.random.PRNGKey(0)
    k_params, k_x = jax.random.split(key)
    params = init_params(k_params)

    # Single-channel 28x28 input: crop of 5 per side leaves 18x18 = 324 feats.
    x = jax.random.normal(k_x, (2, 1, IMG_H, IMG_W), jnp.float32)

    use_bf16 = _default_use_bf16()                 # True only on v5e
    prepared = prepare_params(params, use_bf16=use_bf16)

    fwd = jax.jit(fcnet_segmentation, static_argnames=("out_size", "tb"))
    out = jax.block_until_ready(fwd(x, prepared))

    ref = _reference(x, params)
    tol = 2e-2 if use_bf16 else 1e-4
    assert out.shape == (2, OUT_SIZE, 4, 4), out.shape
    assert jnp.allclose(out, ref, atol=tol, rtol=tol), "mismatch vs reference"

    print("KERNEL_OK")
</pallas_src>

<mosaic_0001>
module attributes {stable_mosaic.version = 11 : i64} {
  func.func @_mlp_kernel(%arg0: i32, %arg1: memref<8x784xf32, #tpu.memory_space<vmem>>, %arg2: memref<784x128xf32, #tpu.memory_space<vmem>>, %arg3: memref<1x128xf32, #tpu.memory_space<vmem>>, %arg4: memref<128x128xf32, #tpu.memory_space<vmem>>, %arg5: memref<1x128xf32, #tpu.memory_space<vmem>>, %arg6: memref<128x160xf32, #tpu.memory_space<vmem>>, %arg7: memref<1x160xf32, #tpu.memory_space<vmem>>, %arg8: memref<8x160xf32, #tpu.memory_space<vmem>>) attributes {dimension_semantics = [#tpu.dimension_semantics<parallel>], iteration_bounds = array<i64: 1>, scalar_prefetch = 0 : i64, scratch_operands = 0 : i64, tpu.core_type = #tpu.core_type<tc>, window_params = [{transform_indices = @transform_0, window_bounds = array<i64: 8, 784>}, {pipeline_mode = #tpu.pipeline_mode<synchronous>, transform_indices = @transform_1, window_bounds = array<i64: 784, 128>}, {pipeline_mode = #tpu.pipeline_mode<synchronous>, transform_indices = @transform_2, window_bounds = array<i64: 1, 128>}, {pipeline_mode = #tpu.pipeline_mode<synchronous>, transform_indices = @transform_3, window_bounds = array<i64: 128, 128>}, {pipeline_mode = #tpu.pipeline_mode<synchronous>, transform_indices = @transform_4, window_bounds = array<i64: 1, 128>}, {pipeline_mode = #tpu.pipeline_mode<synchronous>, transform_indices = @transform_5, window_bounds = array<i64: 128, 160>}, {pipeline_mode = #tpu.pipeline_mode<synchronous>, transform_indices = @transform_6, window_bounds = array<i64: 1, 160>}, {transform_indices = @transform_7, window_bounds = array<i64: 8, 160>}]} {
    %c0 = arith.constant 0 : index
    %c0_0 = arith.constant 0 : index
    %0 = vector.load %arg1[%c0, %c0_0] : memref<8x784xf32, #tpu.memory_space<vmem>>, vector<8x784xf32>
    %c0_1 = arith.constant 0 : index
    %c0_2 = arith.constant 0 : index
    %1 = vector.load %arg2[%c0_1, %c0_2] : memref<784x128xf32, #tpu.memory_space<vmem>>, vector<784x128xf32>
    %cst = arith.constant dense<0.000000e+00> : vector<8x128xf32>
    %2 = tpu.matmul %0, %1, %cst {dimension_numbers = #tpu.dot_dimension_numbers<[1], [0], [0], [1], [0, 0, 1, 1], [], []>} : vector<8x784xf32>, vector<784x128xf32>, vector<8x128xf32> -> vector<8x128xf32>
    %c0_3 = arith.constant 0 : index
    %c0_4 = arith.constant 0 : index
    %3 = vector.load %arg3[%c0_3, %c0_4] : memref<1x128xf32, #tpu.memory_space<vmem>>, vector<1x128xf32>
    %4 = vector.broadcast %3 : vector<1x128xf32> to vector<8x128xf32>
    %5 = arith.addf %2, %4 : vector<8x128xf32>
    %cst_5 = arith.constant 0.000000e+00 : f32
    %6 = vector.broadcast %cst_5 : f32 to vector<8x128xf32>
    %7 = arith.maximumf %5, %6 : vector<8x128xf32>
    %c0_6 = arith.constant 0 : index
    %c0_7 = arith.constant 0 : index
    %8 = vector.load %arg4[%c0_6, %c0_7] : memref<128x128xf32, #tpu.memory_space<vmem>>, vector<128x128xf32>
    %cst_8 = arith.constant dense<0.000000e+00> : vector<8x128xf32>
    %9 = tpu.matmul %7, %8, %cst_8 {dimension_numbers = #tpu.dot_dimension_numbers<[1], [0], [0], [1], [0, 0, 1, 1], [], []>} : vector<8x128xf32>, vector<128x128xf32>, vector<8x128xf32> -> vector<8x128xf32>
    %c0_9 = arith.constant 0 : index
    %c0_10 = arith.constant 0 : index
    %10 = vector.load %arg5[%c0_9, %c0_10] : memref<1x128xf32, #tpu.memory_space<vmem>>, vector<1x128xf32>
    %11 = vector.broadcast %10 : vector<1x128xf32> to vector<8x128xf32>
    %12 = arith.addf %9, %11 : vector<8x128xf32>
    %cst_11 = arith.constant 0.000000e+00 : f32
    %13 = vector.broadcast %cst_11 : f32 to vector<8x128xf32>
    %14 = arith.maximumf %12, %13 : vector<8x128xf32>
    %c0_12 = arith.constant 0 : index
    %c0_13 = arith.constant 0 : index
    %15 = vector.load %arg6[%c0_12, %c0_13] : memref<128x160xf32, #tpu.memory_space<vmem>>, vector<128x160xf32>
    %cst_14 = arith.constant dense<0.000000e+00> : vector<8x160xf32>
    %16 = tpu.matmul %14, %15, %cst_14 {dimension_numbers = #tpu.dot_dimension_numbers<[1], [0], [0], [1], [0, 0, 1, 1], [], []>} : vector<8x128xf32>, vector<128x160xf32>, vector<8x160xf32> -> vector<8x160xf32>
    %c0_15 = arith.constant 0 : index
    %c0_16 = arith.constant 0 : index
    %17 = vector.load %arg7[%c0_15, %c0_16] : memref<1x160xf32, #tpu.memory_space<vmem>>, vector<1x160xf32>
    %18 = vector.broadcast %17 : vector<1x160xf32> to vector<8x160xf32>
    %19 = arith.addf %16, %18 : vector<8x160xf32>
    %c0_17 = arith.constant 0 : index
    %c0_18 = arith.constant 0 : index
    %20 = vector.load %arg8[%c0_17, %c0_18] : memref<8x160xf32, #tpu.memory_space<vmem>>, vector<8x160xf32>
    tpu.vector_store %arg8[%c0_17, %c0_18], %19 {strides = array<i32>} : memref<8x160xf32, #tpu.memory_space<vmem>>, vector<8x160xf32>,
    return
  }
  func.func @transform_0(%arg0: i32) -> (i32, i32) {
    %c0_i32 = arith.constant 0 : i32
    %c0_i32_0 = arith.constant 0 : i32
    return %arg0, %c0_i32 : i32, i32
  }
  func.func @transform_1(%arg0: i32) -> (i32, i32) {
    %c0_i32 = arith.constant 0 : i32
    %c0_i32_0 = arith.constant 0 : i32
    %c0_i32_1 = arith.constant 0 : i32
    return %c0_i32, %c0_i32_0 : i32, i32
  }
  func.func @transform_2(%arg0: i32) -> (i32, i32) {
    %c0_i32 = arith.constant 0 : i32
    %c0_i32_0 = arith.constant 0 : i32
    %c0_i32_1 = arith.constant 0 : i32
    return %c0_i32, %c0_i32_0 : i32, i32
  }
  func.func @transform_3(%arg0: i32) -> (i32, i32) {
    %c0_i32 = arith.constant 0 : i32
    %c0_i32_0 = arith.constant 0 : i32
    %c0_i32_1 = arith.constant 0 : i32
    return %c0_i32, %c0_i32_0 : i32, i32
  }
  func.func @transform_4(%arg0: i32) -> (i32, i32) {
    %c0_i32 = arith.constant 0 : i32
    %c0_i32_0 = arith.constant 0 : i32
    %c0_i32_1 = arith.constant 0 : i32
    return %c0_i32, %c0_i32_0 : i32, i32
  }
  func.func @transform_5(%arg0: i32) -> (i32, i32) {
    %c0_i32 = arith.constant 0 : i32
    %c0_i32_0 = arith.constant 0 : i32
    %c0_i32_1 = arith.constant 0 : i32
    return %c0_i32, %c0_i32_0 : i32, i32
  }
  func.func @transform_6(%arg0: i32) -> (i32, i32) {
    %c0_i32 = arith.constant 0 : i32
    %c0_i32_0 = arith.constant 0 : i32
    %c0_i32_1 = arith.constant 0 : i32
    return %c0_i32, %c0_i32_0 : i32, i32
  }
  func.func @transform_7(%arg0: i32) -> (i32, i32) {
    %c0_i32 = arith.constant 0 : i32
    %c0_i32_0 = arith.constant 0 : i32
    return %arg0, %c0_i32 : i32, i32
  }
}

</mosaic_0001>

<bundles_post_ra>
// kernel: fcnet_segmentation.1
= control target key start
LH: loop header
LB: loop body
LE: loop exit
PB: predicated region body
PF: predicated region fallthrough
CT: control target
= control target key end

     0   :  { %12 = vsyncpa [#allocation3], 0  ;;  %s455_s27 = smov [#allocation2]   ;;  %s456_s29 = smov 128   ;;  %s681_s0 = inlined_call_operand.vmem [shape: f32[8,784], index: 0, kind: input, shape index: {}]   ;;  %s682_s1 = inlined_call_operand.hbm [shape: f32[784,128], index: 1, kind: input, shape index: {}]   ;;  %s683_s2 = inlined_call_operand.vmem [shape: f32[1,128], index: 2, kind: input, shape index: {}]   ;;  %s684_s3 = inlined_call_operand.vmem [shape: f32[128,128], index: 3, kind: input, shape index: {}]   ;;  %s685_s4 = inlined_call_operand.vmem [shape: f32[1,128], index: 4, kind: input, shape index: {}]   ;;  %s686_s5 = inlined_call_operand.vmem [shape: f32[128,160], index: 5, kind: input, shape index: {}]   ;;  %s687_s6 = inlined_call_operand.vmem [shape: f32[1,160], index: 6, kind: input, shape index: {}]   ;;  %s688_s7 = inlined_call_operand.vmem [shape: f32[8,160], index: 7, kind: output, shape index: {}]  }
   0x1   :  { %s19_s26 = sshll.u32 %s682_s1, 4  ;;  %s21_s28 = sshll.u32 %s455_s27, 4  ;;  %s20_s26 = int_to_ptr.hbm [resolvable:$true] %s19_s26  ;;  %s22_s28 = int_to_ptr.vmem [resolvable:$true] %s21_s28 }
   0x2   :  { %s457_s30 = smov 8  }
   0x3   :  { %27 = dma.hbm_to_vmem [thread:$0]  %s20_s26, 12544, %s22_s28, [#allocation3], %s456_s29, %s456_s29, %s457_s30  }
   0x4   :  { %453 = dma.done.wait [#allocation3], 12544  }
   0x5   :  { %454 = vsyncadd [#allocation3], 4294954752  ;;  %v64_v0 = vld [vmem:[#allocation2 + $0x78] sm:$0xff]  ;;  %v63_v1 = vld [vmem:[#allocation2 + $0x70] sm:$0xff]  ;;  %vm151_vm0 = vcmask 130048   ;;  %vm416_vm1 = vcmask 261120  }
   0x6   :  { %v80_v2 = vld [vmem:[#allocation2 + $0xf8] sm:$0xff]  ;;  %155 = vmatpush.msra.mxu0 %v64_v0  ;;  %v79_v3 = vld [vmem:[#allocation2 + $0xf0] sm:$0xff]  ;;  %v62_v4 = vld [vmem:[#allocation2 + $0x68] sm:$0xff] }
   0x7   :  { %175 = vmatpush.msra.mxu1 %v80_v2  ;;  %v78_v5 = vld [vmem:[#allocation2 + $0xe8] sm:$0xff]  ;;  %v61_v6 = vld [vmem:[#allocation2 + $0x60] sm:$0xff]  ;;  %v60_v8 = vld [vmem:[#allocation2 + $0x58] sm:$0xff] }
   0x8   :  { %156 = vmatpush.msra.mxu0 %v63_v1  ;;  %v77_v7 = vld [vmem:[#allocation2 + $0xe0] sm:$0xff]  ;;  %v76_v9 = vld [vmem:[#allocation2 + $0xd8] sm:$0xff]  ;;  %v59_v10 = vld [vmem:[#allocation2 + $0x50] sm:$0xff] }
   0x9   :  { %176 = vmatpush.msra.mxu1 %v79_v3  ;;  %v96_v11 = vld [vmem:[#allocation2 + $0x178] sm:$0xff]  ;;  %v75_v12 = vld [vmem:[#allocation2 + $0xd0] sm:$0xff]  ;;  %v94_v15 = vld [vmem:[#allocation2 + $0x168] sm:$0xff] }
   0xa   :  { %157 = vmatpush.msra.mxu0 %v62_v4  ;;  %195 = vmatpush.msra.mxu2 %v96_v11  ;;  %v95_v13 = vld [vmem:[#allocation2 + $0x170] sm:$0xff]  ;;  %v112_v14 = vld [vmem:[#allocation2 + $0x1f8] sm:$0xff]  ;;  %v58_v17 = vld [vmem:[#allocation2 + $0x48] sm:$0xff] }
   0xb   :  { %177 = vmatpush.msra.mxu1 %v78_v5  ;;  %v111_v16 = vld [vmem:[#allocation2 + $0x1f0] sm:$0xff]  ;;  %v74_v18 = vld [vmem:[#allocation2 + $0xc8] sm:$0xff]  ;;  %215 = vmatpush.msra.mxu3 %v112_v14  ;;  %v93_v19 = vld [vmem:[#allocation2 + $0x160] sm:$0xff] }
   0xc   :  { %158 = vmatpush.msra.mxu0 %v61_v6  ;;  %196 = vmatpush.msra.mxu2 %v95_v13  ;;  %v110_v20 = vld [vmem:[#allocation2 + $0x1e8] sm:$0xff]  ;;  %v57_v21 = vld [vmem:[#allocation2 + $0x40] sm:$0xff]  ;;  %v92_v23 = vld [vmem:[#allocation2 + $0x158] sm:$0xff] }
   0xd   :  { %178 = vmatpush.msra.mxu1 %v77_v7  ;;  %v73_v22 = vld [vmem:[#allocation2 + $0xc0] sm:$0xff]  ;;  %216 = vmatpush.msra.mxu3 %v111_v16  ;;  %v56_v25 = vld [vmem:[#allocation2 + $0x38] sm:$0xff]  ;;  %v91_v27 = vld [vmem:[#allocation2 + $0x150] sm:$0xff] }
   0xe   :  { %159 = vmatpush.msra.mxu0 %v60_v8  ;;  %197 = vmatpush.msra.mxu2 %v94_v15  ;;  %v109_v24 = vld [vmem:[#allocation2 + $0x1e0] sm:$0xff]  ;;  %v72_v26 = vld [vmem:[#allocation2 + $0xb8] sm:$0xff]  ;;  %v55_v29 = vld [vmem:[#allocation2 + $0x30] sm:$0xff] }
   0xf   :  { %179 = vmatpush.msra.mxu1 %v76_v9  ;;  %217 = vmatpush.msra.mxu3 %v110_v20  ;;  %v108_v28 = vld [vmem:[#allocation2 + $0x1d8] sm:$0xff]  ;;  %v71_v30 = vld [vmem:[#allocation2 + $0xb0] sm:$0xff]  ;;  %v90_v31 = vld [vmem:[#allocation2 + $0x148] sm:$0xff] }
  0x10   :  { %160 = vmatpush.msra.mxu0 %v59_v10  ;;  %198 = vmatpush.msra.mxu2 %v93_v19  ;;  %v107_v32 = vld [vmem:[#allocation2 + $0x1d0] sm:$0xff]  ;;  %v54_v33 = vld [vmem:[#allocation2 + $0x28] sm:$0xff]  ;;  %v89_v35 = vld [vmem:[#allocation2 + $0x140] sm:$0xff] }
  0x11   :  { %180 = vmatpush.msra.mxu1 %v75_v12  ;;  %218 = vmatpush.msra.mxu3 %v109_v24  ;;  %v70_v34 = vld [vmem:[#allocation2 + $0xa8] sm:$0xff]  ;;  %v53_v37 = vld [vmem:[#allocation2 + $0x20] sm:$0xff]  ;;  %v88_v39 = vld [vmem:[#allocation2 + $0x138] sm:$0xff] }
  0x12   :  { %161 = vmatpush.msra.mxu0 %v58_v17  ;;  %199 = vmatpush.msra.mxu2 %v92_v23  ;;  %v106_v36 = vld [vmem:[#allocation2 + $0x1c8] sm:$0xff]  ;;  %v69_v38 = vld [vmem:[#allocation2 + $0xa0] sm:$0xff]  ;;  %v52_v41 = vld [vmem:[#allocation2 + $0x18] sm:$0xff] }
  0x13   :  { %181 = vmatpush.msra.mxu1 %v74_v18  ;;  %219 = vmatpush.msra.mxu3 %v108_v28  ;;  %v105_v40 = vld [vmem:[#allocation2 + $0x1c0] sm:$0xff]  ;;  %v68_v42 = vld [vmem:[#allocation2 + $0x98] sm:$0xff]  ;;  %v87_v43 = vld [vmem:[#allocation2 + $0x130] sm:$0xff] }
  0x14   :  { %162 = vmatpush.msra.mxu0 %v57_v21  ;;  %200 = vmatpush.msra.mxu2 %v91_v27  ;;  %v104_v44 = vld [vmem:[#allocation2 + $0x1b8] sm:$0xff]  ;;  %v51_v45 = vld [vmem:[#allocation2 + $0x10] sm:$0xff]  ;;  %v86_v47 = vld [vmem:[#allocation2 + $0x128] sm:$0xff] }
  0x15   :  { %182 = vmatpush.msra.mxu1 %v73_v22  ;;  %220 = vmatpush.msra.mxu3 %v107_v32  ;;  %v67_v46 = vld [vmem:[#allocation2 + $0x90] sm:$0xff]  ;;  %v50_v49 = vld [vmem:[#allocation2 + $0x8] sm:$0xff]  ;;  %v85_v51 = vld [vmem:[#allocation2 + $0x120] sm:$0xff] }
  0x16   :  { %163 = vmatpush.msra.mxu0 %v56_v25  ;;  %201 = vmatpush.msra.mxu2 %v90_v31  ;;  %v103_v48 = vld [vmem:[#allocation2 + $0x1b0] sm:$0xff]  ;;  %v66_v50 = vld [vmem:[#allocation2 + $0x88] sm:$0xff]  ;;  %v49_v53 = vld [vmem:[#allocation2] sm:$0xff] }
  0x17   :  { %183 = vmatpush.msra.mxu1 %v72_v26  ;;  %221 = vmatpush.msra.mxu3 %v106_v36  ;;  %v102_v52 = vld [vmem:[#allocation2 + $0x1a8] sm:$0xff]  ;;  %v65_v54 = vld [vmem:[#allocation2 + $0x80] sm:$0xff]  ;;  %v128_v55 = vld [vmem:[#allocation2 + $0x278] sm:$0xff] }
  0x18   :  { %164 = vmatpush.msra.mxu0 %v55_v29  ;;  %202 = vmatpush.msra.mxu2 %v89_v35  ;;  %v144_v56 = vld [vmem:[#allocation2 + $0x2f8] sm:$0xff]  ;;  %v101_v58 = vld [vmem:[#allocation2 + $0x1a0] sm:$0xff]  ;;  %v127_v59 = vld [vmem:[#allocation2 + $0x270] sm:$0xff] }
  0x19   :  { %184 = vmatpush.msra.mxu1 %v71_v30  ;;  %222 = vmatpush.msra.mxu3 %v105_v40  ;;  %v84_v57 = vld [vmem:[#allocation2 + $0x118] sm:$0xff]  ;;  %v143_v60 = vld [vmem:[#allocation2 + $0x2f0] sm:$0xff]  ;;  %v126_v63 = vld [vmem:[#allocation2 + $0x268] sm:$0xff] }
  0x1a   :  { %165 = vmatpush.msra.mxu0 %v54_v33  ;;  %203 = vmatpush.msra.mxu2 %v88_v39  ;;  %v83_v61 = vld [vmem:[#allocation2 + $0x110] sm:$0xff]  ;;  %v100_v62 = vld [vmem:[#allocation2 + $0x198] sm:$0xff]  ;;  %v142_v0 = vld [vmem:[#allocation2 + $0x2e8] sm:$0xff] }
  0x1b   :  { %185 = vmatpush.msra.mxu1 %v70_v34  ;;  %223 = vmatpush.msra.mxu3 %v104_v44  ;;  %v82_v1 = vld [vmem:[#allocation2 + $0x108] sm:$0xff]  ;;  %v99_v2 = vld [vmem:[#allocation2 + $0x190] sm:$0xff]  ;;  %v125_v3 = vld [vmem:[#allocation2 + $0x260] sm:$0xff] }
  0x1c   :  { %166 = vmatpush.msra.mxu0 %v53_v37  ;;  %204 = vmatpush.msra.mxu2 %v87_v43  ;;  %v141_v4 = vld [vmem:[#allocation2 + $0x2e0] sm:$0xff]  ;;  %v98_v6 = vld [vmem:[#allocation2 + $0x188] sm:$0xff]  ;;  %v124_v7 = vld [vmem:[#allocation2 + $0x258] sm:$0xff] }
  0x1d   :  { %186 = vmatpush.msra.mxu1 %v69_v38  ;;  %224 = vmatpush.msra.mxu3 %v103_v48  ;;  %v81_v5 = vld [vmem:[#allocation2 + $0x100] sm:$0xff]  ;;  %v140_v8 = vld [vmem:[#allocation2 + $0x2d8] sm:$0xff]  ;;  %v44_v9 = vld [vmem:[%s681_s0 + $0x10] sm:$0xff] }
  0x1e   :  { %167 = vmatpush.msra.mxu0 %v52_v41  ;;  %205 = vmatpush.msra.mxu2 %v86_v47  ;;  %v97_v10 = vld [vmem:[#allocation2 + $0x180] sm:$0xff]  ;;  %v123_v11 = vld [vmem:[#allocation2 + $0x250] sm:$0xff]  ;;  %v146_v13 = vld [vmem:[#allocation2 + $0x308] sm:$0xff] }
  0x1f   :  { %187 = vmatpush.msra.mxu1 %v68_v42  ;;  %225 = vmatpush.msra.mxu3 %v102_v52  ;;  %v139_v12 = vld [vmem:[#allocation2 + $0x2d0] sm:$0xff]  ;;  %v42_v14 = vld [vmem:[%s681_s0] sm:$0xff]  ;;  %v122_v15 = vld [vmem:[#allocation2 + $0x248] sm:$0xff] }
  0x20   :  { %168 = vmatpush.msra.mxu0 %v51_v45  ;;  %206 = vmatpush.msra.mxu2 %v85_v51  ;;  %v138_v16 = vld [vmem:[#allocation2 + $0x2c8] sm:$0xff]  ;;  %v45_v17 = vld [vmem:[%s681_s0 + $0x18] sm:$0xff]  ;;  %v121_v19 = vld [vmem:[#allocation2 + $0x240] sm:$0xff] }
  0x21   :  { %188 = vmatpush.msra.mxu1 %v67_v46  ;;  %226 = vmatpush.msra.mxu3 %v101_v58  ;;  %v43_v18 = vld [vmem:[%s681_s0 + $0x8] sm:$0xff]  ;;  %v137_v20 = vld [vmem:[#allocation2 + $0x2c0] sm:$0xff]  ;;  %v311_v22 = vld [vmem:[%s684_s3 + $0x78] sm:$0xff] }
  0x22   :  { %169 = vmatpush.msra.mxu0 %v50_v49  ;;  %207 = vmatpush.msra.mxu2 %v84_v57  ;;  %v145_v21 = vld [vmem:[#allocation2 + $0x300] sm:$0xff]  ;;  %v120_v23 = vld [vmem:[#allocation2 + $0x238] sm:$0xff]  ;;  %v48_v25 = vld [vmem:[%s681_s0 + $0x30] sm:$0xff] }
  0x23   :  { %189 = vmatpush.msra.mxu1 %v66_v50  ;;  %227 = vmatpush.msra.mxu3 %v100_v62  ;;  %v136_v24 = vld [vmem:[#allocation2 + $0x2b8] sm:$0xff]  ;;  %v310_v26 = vld [vmem:[%s684_s3 + $0x70] sm:$0xff]  ;;  %v309_v29 = vld [vmem:[%s684_s3 + $0x68] sm:$0xff] }
  0x24   :  { %170 = vmatpush.msra.mxu0 %v49_v53  ;;  %208 = vmatpush.msra.mxu2 %v83_v61  ;;  %v119_v27 = vld [vmem:[#allocation2 + $0x230] sm:$0xff]  ;;  %v118_v30 = vld [vmem:[#allocation2 + $0x228] sm:$0xff]  ;;  %v308_v32 = vld [vmem:[%s684_s3 + $0x60] sm:$0xff] }
  0x25   :  { %190 = vmatpush.msra.mxu1 %v65_v54  ;;  %228 = vmatpush.msra.mxu3 %v99_v2  ;;  %v135_v28 = vld [vmem:[#allocation2 + $0x2b0] sm:$0xff]  ;;  %v134_v31 = vld [vmem:[#allocation2 + $0x2a8] sm:$0xff]  ;;  %v117_v33 = vld [vmem:[#allocation2 + $0x220] sm:$0xff] }
  0x26   :  { %235 = vmatpush.msrb.mxu0 %v128_v55  ;;  %209 = vmatpush.msra.mxu2 %v82_v1  ;;  %v133_v34 = vld [vmem:[#allocation2 + $0x2a0] sm:$0xff]  ;;  %v307_v35 = vld [vmem:[%s684_s3 + $0x58] sm:$0xff]  ;;  %v306_v38 = vld [vmem:[%s684_s3 + $0x50] sm:$0xff] }
  0x27   :  { %255 = vmatpush.msrb.mxu1 %v144_v56  ;;  %229 = vmatpush.msra.mxu3 %v98_v6  ;;  %v116_v36 = vld [vmem:[#allocation2 + $0x218] sm:$0xff]  ;;  %v115_v39 = vld [vmem:[#allocation2 + $0x210] sm:$0xff]  ;;  %v305_v41 = vld [vmem:[%s684_s3 + $0x48] sm:$0xff] }
  0x28   :  { %236 = vmatpush.msrb.mxu0 %v127_v59  ;;  %210 = vmatpush.msra.mxu2 %v81_v5  ;;  %v132_v37 = vld [vmem:[#allocation2 + $0x298] sm:$0xff]  ;;  %v131_v40 = vld [vmem:[#allocation2 + $0x290] sm:$0xff]  ;;  %v114_v42 = vld [vmem:[#allocation2 + $0x208] sm:$0xff] }
  0x29   :  { %256 = vmatpush.msrb.mxu1 %v143_v60  ;;  %211 = vmatmul.f32.vlgmr.msra.gmra.mxu2 %v44_v9  ;;  %v130_v43 = vld [vmem:[#allocation2 + $0x288] sm:$0xff]  ;;  %v113_v44 = vld [vmem:[#allocation2 + $0x200] sm:$0xff]  ;;  %v303_v49 = vld [vmem:[%s684_s3 + $0x38] sm:$0xff] }
  0x2a   :  { %237 = vmatpush.msrb.mxu0 %v126_v63  ;;  %230 = vmatpush.msra.mxu3 %v97_v10  ;;  %v129_v45 = vld [vmem:[#allocation2 + $0x280] sm:$0xff]  ;;  %v47_v47 = vld [vmem:[%s681_s0 + $0x28] sm:$0xff]  ;;  %v302_v50 = vld [vmem:[%s684_s3 + $0x30] sm:$0xff] }
  0x2b   :  { %257 = vmatpush.msrb.mxu1 %v142_v0  ;;  %289 = vmatpush.msrb.mxu2 %v146_v13  ;;  %v46_v46 = vld [vmem:[%s681_s0 + $0x20] sm:$0xff]  ;;  %v301_v51 = vld [vmem:[%s684_s3 + $0x28] sm:$0xff]  ;;  %v299_v53 = vld [vmem:[%s684_s3 + $0x18] sm:$0xff] }
  0x2c   :  { %238 = vmatpush.msrb.mxu0 %v125_v3  ;;  %231 = vmatmul.f32.vlgmr.msra.gmra.mxu3 %v45_v17  ;;  %v304_v48 = vld [vmem:[%s684_s3 + $0x40] sm:$0xff]  ;;  %v298_v54 = vld [vmem:[%s684_s3 + $0x10] sm:$0xff]  ;;  %v297_v55 = vld [vmem:[%s684_s3 + $0x8] sm:$0xff] }
  0x2d   :  { %258 = vmatpush.msrb.mxu1 %v141_v4  ;;  %171 = vmatmul.f32.vlgmr.msra.gmra.mxu0 %v42_v14  ;;  %v300_v52 = vld [vmem:[%s684_s3 + $0x20] sm:$0xff]  ;;  %v367_v57 = vld [vmem:[%s686_s5 + $0xf0] sm:$0xff]  ;;  %v368_v58 = vld [vmem:[%s686_s5 + $0xf8] sm:$0xff] }
  0x2e   :  { %239 = vmatpush.msrb.mxu0 %v124_v7  ;;  %191 = vmatmul.f32.vlgmr.msra.gmra.mxu1 %v43_v18  ;;  %v296_v56 = vld [vmem:[%s684_s3] sm:$0xff]  ;;  %v366_v60 = vld [vmem:[%s686_s5 + $0xe8] sm:$0xff]  ;;  %v363_v61 = vld [vmem:[%s686_s5 + $0xd0] sm:$0xff] }
  0x2f   :  { %259 = vmatpush.msrb.mxu1 %v140_v8  ;;  %290 = vmatpush.msrb.mxu2 %v145_v21  ;;  %v365_v59 = vld [vmem:[%s686_s5 + $0xe0] sm:$0xff]  ;;  %v364_v62 = vld [vmem:[%s686_s5 + $0xd8] sm:$0xff]  ;;  %v362_v1 = vld [vmem:[%s686_s5 + $0xc8] sm:$0xff] }
  0x30   :  { %240 = vmatpush.msrb.mxu0 %v123_v11  ;;  %316 = vmatpush.msrb.mxu3 %v311_v22  ;;  %v427_v63 = vld [vmem:[%s683_s2] ss:$0 sm:$0xff]  ;;  %v359_v3 = vld [vmem:[%s686_s5 + $0xb0] sm:$0xff]  ;;  %v360_v4 = vld [vmem:[%s686_s5 + $0xb8] sm:$0xff] }
  0x31   :  { %260 = vmatpush.msrb.mxu1 %v139_v12  ;;  %423 = vmatmul.msk.f32.vlgmr.msrb.gmra.mxu2 %vm151_vm0, %v48_v25  ;;  %v361_v0 = vld [vmem:[%s686_s5 + $0xc0] sm:$0xff]  ;;  %v358_v7 = vld [vmem:[%s686_s5 + $0xa8] sm:$0xff]  ;;  %v355_v9 = vld [vmem:[%s686_s5 + $0x90] sm:$0xff] }
  0x32   :  { %241 = vmatpush.msrb.mxu0 %v122_v15  ;;  %317 = vmatpush.msrb.mxu3 %v310_v26  ;;  %v357_v6 = vld [vmem:[%s686_s5 + $0xa0] sm:$0xff]  ;;  %v356_v10 = vld [vmem:[%s686_s5 + $0x98] sm:$0xff]  ;;  %v354_v13 = vld [vmem:[%s686_s5 + $0x88] sm:$0xff] }
  0x33   :  { %261 = vmatpush.msrb.mxu1 %v138_v16  ;;  %375 = vmatpush.msra.mxu2 %v367_v57  ;;  %v353_v12 = vld [vmem:[%s686_s5 + $0x80] sm:$0xff]  ;;  %v351_v15 = vld [vmem:[%s686_s5 + $0x70] sm:$0xff]  ;;  %v352_v16 = vld [vmem:[%s686_s5 + $0x78] sm:$0xff] }
  0x34   :  { %242 = vmatpush.msrb.mxu0 %v121_v19  ;;  %318 = vmatpush.msrb.mxu3 %v309_v29  ;;  %v349_v18 = vld [vmem:[%s686_s5 + $0x60] sm:$0xff]  ;;  %v350_v19 = vld [vmem:[%s686_s5 + $0x68] sm:$0xff]  ;;  %v347_v21 = vld [vmem:[%s686_s5 + $0x50] sm:$0xff] }
  0x35   :  { %262 = vmatpush.msrb.mxu1 %v137_v20  ;;  %376 = vmatpush.msra.mxu2 %v365_v59  ;;  %v348_v22 = vld [vmem:[%s686_s5 + $0x58] sm:$0xff]  ;;  %v346_v25 = vld [vmem:[%s686_s5 + $0x48] sm:$0xff]  ;;  %v343_v26 = vld [vmem:[%s686_s5 + $0x30] sm:$0xff] }
  0x36   :  { %243 = vmatpush.msrb.mxu0 %v120_v23  ;;  %319 = vmatpush.msrb.mxu3 %v308_v32 }
  0x37   :  { %263 = vmatpush.msrb.mxu1 %v136_v24  ;;  %377 = vmatpush.msra.mxu2 %v363_v61  ;;  %v345_v24 = vld [vmem:[%s686_s5 + $0x40] sm:$0xff] }
  0x38   :  { %244 = vmatpush.msrb.mxu0 %v119_v27  ;;  %320 = vmatpush.msrb.mxu3 %v307_v35  ;;  %v344_v27 = vld [vmem:[%s686_s5 + $0x38] sm:$0xff]  ;;  %v341_v35 = vld [vmem:[%s686_s5 + $0x20] sm:$0xff] }
  0x39   :  { %264 = vmatpush.msrb.mxu1 %v135_v28  ;;  %378 = vmatpush.msra.mxu2 %v361_v0 }
  0x3a   :  { %245 = vmatpush.msrb.mxu0 %v118_v30  ;;  %321 = vmatpush.msrb.mxu3 %v306_v38  ;;  %v340_v38 = vld [vmem:[%s686_s5 + $0x18] sm:$0xff] }
  0x3b   :  { %265 = vmatpush.msrb.mxu1 %v134_v31  ;;  %379 = vmatpush.msra.mxu2 %v359_v3 }
  0x3c   :  { %246 = vmatpush.msrb.mxu0 %v117_v33  ;;  %322 = vmatpush.msrb.mxu3 %v305_v41  ;;  %v428_v41 = vld [vmem:[%s685_s4] ss:$0 sm:$0xff] }
  0x3d   :  { %266 = vmatpush.msrb.mxu1 %v133_v34  ;;  %380 = vmatpush.msra.mxu2 %v357_v6 }
  0x3e   :  { %247 = vmatpush.msrb.mxu0 %v116_v36  ;;  %323 = vmatpush.msrb.mxu3 %v304_v48  ;;  %v342_v36 = vld [vmem:[%s686_s5 + $0x28] sm:$0xff] }
  0x3f   :  { %267 = vmatpush.msrb.mxu1 %v132_v37  ;;  %381 = vmatpush.msra.mxu2 %v355_v9  ;;  %v339_v37 = vld [vmem:[%s686_s5 + $0x10] sm:$0xff] }
  0x40   :  { %248 = vmatpush.msrb.mxu0 %v115_v39  ;;  %324 = vmatpush.msrb.mxu3 %v303_v49  ;;  %v337_v39 = vld [vmem:[%s686_s5] sm:$0xff] }
  0x41   :  { %268 = vmatpush.msrb.mxu1 %v131_v40  ;;  %382 = vmatpush.msra.mxu2 %v353_v12  ;;  %v338_v40 = vld [vmem:[%s686_s5 + $0x8] sm:$0xff] }
  0x42   :  { %249 = vmatpush.msrb.mxu0 %v114_v42  ;;  %325 = vmatpush.msrb.mxu3 %v302_v50 }
  0x43   :  { %269 = vmatpush.msrb.mxu1 %v130_v43  ;;  %383 = vmatpush.msra.mxu2 %v351_v15 }
  0x44   :  { %250 = vmatpush.msrb.mxu0 %v113_v44  ;;  %326 = vmatpush.msrb.mxu3 %v301_v51 }
  0x45   :  { %270 = vmatpush.msrb.mxu1 %v129_v45  ;;  %251 = vmatmul.f32.vlgmr.msrb.gmra.mxu0 %v46_v46  ;;  %v369_v45 = vld [vmem:[%s687_s6] sm:$0x3] }
  0x46   :  { %271 = vmatmul.f32.vlgmr.msrb.gmra.mxu1 %v47_v47  ;;  %327 = vmatpush.msrb.mxu3 %v300_v52  ;;  %v372_v46 = vperm.slane %v369_v45, 1  ;;  %v371_v49 = vperm.slane %v369_v45, 0 }
  0x47   :  { %395 = vmatpush.msra.mxu0 %v368_v58  ;;  %384 = vmatpush.msra.mxu2 %v349_v18 }
  0x48   :  { %328 = vmatpush.msrb.mxu3 %v299_v53 }
  0x49   :  { %396 = vmatpush.msra.mxu0 %v366_v60  ;;  %385 = vmatpush.msra.mxu2 %v347_v21 }
  0x4a   :  { %329 = vmatpush.msrb.mxu3 %v298_v54 }
  0x4b   :  { %397 = vmatpush.msra.mxu0 %v364_v62  ;;  %386 = vmatpush.msra.mxu2 %v345_v24 }
  0x4c   :  { %330 = vmatpush.msrb.mxu3 %v297_v55 }
  0x4d   :  { %398 = vmatpush.msra.mxu0 %v362_v1  ;;  %387 = vmatpush.msra.mxu2 %v343_v26 }
  0x4e   :  { %331 = vmatpush.msrb.mxu3 %v296_v56 }
  0x4f   :  { %399 = vmatpush.msra.mxu0 %v360_v4  ;;  %388 = vmatpush.msra.mxu2 %v341_v35 }
  0x51   :  { %400 = vmatpush.msra.mxu0 %v358_v7  ;;  %389 = vmatpush.msra.mxu2 %v339_v37 }
  0x53   :  { %401 = vmatpush.msra.mxu0 %v356_v10  ;;  %390 = vmatpush.msra.mxu2 %v337_v39 }
  0x55   :  { %402 = vmatpush.msra.mxu0 %v354_v13 }
  0x57   :  { %403 = vmatpush.msra.mxu0 %v352_v16 }
  0x59   :  { %404 = vmatpush.msra.mxu0 %v350_v19 }
  0x5b   :  { %405 = vmatpush.msra.mxu0 %v348_v22 }
  0x5d   :  { %406 = vmatpush.msra.mxu0 %v346_v25 }
  0x5f   :  { %407 = vmatpush.msra.mxu0 %v344_v27 }
  0x61   :  { %408 = vmatpush.msra.mxu0 %v342_v36 }
  0x63   :  { %409 = vmatpush.msra.mxu0 %v340_v38 }
  0x65   :  { %410 = vmatpush.msra.mxu0 %v338_v40 }
  0xaa   :  { %v172_v2 = vpop.f32.mrf.mxu0 }
  0xab   :  { %v173_v5 = vadd.f32 %v427_v63, %v172_v2  ;;  %v192_v8 = vpop.f32.mrf.mxu1 }
  0xac   :  { %v212_v14 = vpop.f32.mrf.mxu2 }
  0xad   :  { %v193_v11 = vadd.f32 %v192_v8, %v173_v5 }
  0xaf   :  { %v213_v17 = vadd.f32 %v212_v14, %v193_v11  ;;  %v232_v20 = vpop.f32.mrf.mxu3 }
  0xb1   :  { %v233_v23 = vadd.f32 %v232_v20, %v213_v17 }
  0xb4   :  { %v292_v31 = vpop.f32.mrf.mxu2 }
  0xc2   :  { %v252_v28 = vpop.f32.mrf.mxu0 }
  0xc3   :  { %v272_v29 = vpop.f32.mrf.mxu1  ;;  %v253_v30 = vadd.f32 %v252_v28, %v233_v23 }
  0xc5   :  { %v273_v32 = vadd.f32 %v272_v29, %v253_v30 }
  0xc7   :  { %v293_v33 = vadd.f32 %v292_v31, %v273_v32 }
  0xc9   :  { %v295_v34 = vmax.f32 %v293_v33, 0.0 }
  0xcb   :  { %332 = vmatmul.f32.vlgmr.msrb.gmra.mxu3 %v295_v34 }
 0x14e   :  { %v333_v42 = vpop.f32.mrf.mxu3 }
 0x14f   :  { %v334_v43 = vadd.f32 %v428_v41, %v333_v42 }
 0x151   :  { %v336_v44 = vmax.f32 %v334_v43, 0.0 }
 0x153   :  { %391 = vmatmul.f32.vlgmr.msra.gmra.mxu2 %v336_v44  ;;  %411 = vmatmul.f32.vlgmr.msra.gmra.mxu0 %v336_v44 }
 0x1d0   :  { %v412_v47 = vpop.f32.mrf.mxu0 }
 0x1d1   :  { %v413_v48 = vadd.f32 %v412_v47, %v372_v46 }
 0x1d3   :  { %417 = vst.msk [vmem:[%s688_s7 + $0x8] sm:$0xff] %vm416_vm1, %v413_v48 }
 0x1d6   :  { %v392_v50 = vpop.f32.mrf.mxu2 }
 0x1d7   :  { %v393_v51 = vadd.f32 %v392_v50, %v371_v49 }
 0x1d9   :  { %415 = vst [vmem:[%s688_s7] sm:$0xff] %v393_v51 }
 0x1da   :  { %422 = vsyncpa [#allocation3], 1 }

</bundles_post_ra>
